<compile_context>
chip_gen: v7x
topology: tpu7x:2x2x1
jax: 0.10.0
libtpu: 0.0.40
codegen_flags: <defaults>
</compile_context>

<pallas_src>
import jax
import jax.numpy as jnp
from jax.experimental import pallas as pl
from jax.experimental.pallas import tpu as pltpu

IN_FEATURES = 2048   # resnet50 fc.in_features
NUM_CLASSES = 7


def _linear_kernel(x_ref, w_ref, b_ref, o_ref):
    # x_ref: [TB, F]  (VMEM)
    # w_ref: [F,  C]  (VMEM) — natural (unpadded) class dim; Mosaic lane-pads.
    # b_ref: [1,  C]  (VMEM)
    # o_ref: [TB, C]
    acc = jnp.dot(x_ref[...], w_ref[...], preferred_element_type=jnp.float32)
    o_ref[...] = (acc + b_ref[...]).astype(o_ref.dtype)


def prepare_fc_params(weight, bias):
    """One-time parameter prep (hoisted out of the per-call forward path).

    weight: [NUM_CLASSES, IN_FEATURES]  (PyTorch nn.Linear layout)
    bias:   [NUM_CLASSES]
    returns (w_t [F, C], b2 [1, C]) ready to feed the kernel.
    """
    w_t = jnp.asarray(weight).T           # [F, C]
    b2 = jnp.asarray(bias).reshape(1, -1)  # [1, C]
    return w_t, b2


def fc_forward(x, w_t, b2, *, tb=256):
    """y = x @ weight.T + bias  (PyTorch nn.Linear semantics).

    x:   [B, F] float32
    w_t: [F, C] float32  (pre-transposed weight from prepare_fc_params)
    b2:  [1, C] float32
    returns [B, C] float32
    """
    B, F = x.shape
    C = w_t.shape[1]

    # Batch tiling: shard across TensorCores (v7x megacore) when B is large;
    # at small B collapse to a single full-array block (always legal).
    if B % tb != 0:
        tb = B
    grid = (B // tb,)

    return pl.pallas_call(
        _linear_kernel,
        out_shape=jax.ShapeDtypeStruct((B, C), jnp.float32),
        grid=grid,
        in_specs=[
            pl.BlockSpec((tb, F), lambda i: (i, 0)),   # x tile per grid step
            pl.BlockSpec((F, C), lambda i: (0, 0)),    # weight VMEM-resident
            pl.BlockSpec((1, C), lambda i: (0, 0)),    # bias VMEM-resident
        ],
        out_specs=pl.BlockSpec((tb, C), lambda i: (i, 0)),
        compiler_params=pltpu.CompilerParams(
            dimension_semantics=("parallel",),
        ),
    )(x, w_t, b2)


if __name__ == "__main__":
    key = jax.random.PRNGKey(0)
    kx, kw, kb = jax.random.split(key, 3)

    # Deterministic synthetic parameters (shapes from the module's __init__).
    bound = 1.0 / (IN_FEATURES ** 0.5)
    weight = jax.random.uniform(
        kw, (NUM_CLASSES, IN_FEATURES), jnp.float32, -bound, bound)
    bias = jax.random.uniform(kb, (NUM_CLASSES,), jnp.float32, -bound, bound)

    # Example input: batch=2, features=2048 (what model.fc consumes).
    x = jax.random.normal(kx, (2, IN_FEATURES), jnp.float32)

    # One-time parameter prep (not part of the per-call path).
    w_t, b2 = prepare_fc_params(weight, bias)
    jax.block_until_ready((w_t, b2))

    fwd = jax.jit(fc_forward)
    y = fwd(x, w_t, b2)
    jax.block_until_ready(y)

    # Sanity check against plain-JAX reference.
    y_ref = x @ weight.T + bias
    assert y.shape == (2, NUM_CLASSES)
    assert jnp.allclose(y, y_ref, atol=1e-4, rtol=1e-4)

    print("KERNEL_OK")
</pallas_src>

<mosaic_0001>
module attributes {stable_mosaic.version = 11 : i64} {
  func.func @_linear_kernel(%arg0: i32, %arg1: memref<2x2048xf32, #tpu.memory_space<vmem>>, %arg2: memref<2048x7xf32, #tpu.memory_space<vmem>>, %arg3: memref<1x7xf32, #tpu.memory_space<vmem>>, %arg4: memref<2x7xf32, #tpu.memory_space<vmem>>) attributes {dimension_semantics = [#tpu.dimension_semantics<parallel>], iteration_bounds = array<i64: 1>, scalar_prefetch = 0 : i64, scratch_operands = 0 : i64, tpu.core_type = #tpu.core_type<tc>, window_params = [{transform_indices = @transform_0, window_bounds = array<i64: 2, 2048>}, {pipeline_mode = #tpu.pipeline_mode<synchronous>, transform_indices = @transform_1, window_bounds = array<i64: 2048, 7>}, {pipeline_mode = #tpu.pipeline_mode<synchronous>, transform_indices = @transform_2, window_bounds = array<i64: 1, 7>}, {transform_indices = @transform_3, window_bounds = array<i64: 2, 7>}]} {
    %c0 = arith.constant 0 : index
    %c0_0 = arith.constant 0 : index
    %0 = vector.load %arg1[%c0, %c0_0] : memref<2x2048xf32, #tpu.memory_space<vmem>>, vector<2x2048xf32>
    %c0_1 = arith.constant 0 : index
    %c0_2 = arith.constant 0 : index
    %1 = vector.load %arg2[%c0_1, %c0_2] : memref<2048x7xf32, #tpu.memory_space<vmem>>, vector<2048x7xf32>
    %cst = arith.constant dense<0.000000e+00> : vector<2x7xf32>
    %2 = tpu.matmul %0, %1, %cst {dimension_numbers = #tpu.dot_dimension_numbers<[1], [0], [0], [1], [0, 0, 1, 1], [], []>} : vector<2x2048xf32>, vector<2048x7xf32>, vector<2x7xf32> -> vector<2x7xf32>
    %c0_3 = arith.constant 0 : index
    %c0_4 = arith.constant 0 : index
    %3 = vector.load %arg3[%c0_3, %c0_4] : memref<1x7xf32, #tpu.memory_space<vmem>>, vector<1x7xf32>
    %4 = vector.broadcast %3 : vector<1x7xf32> to vector<2x7xf32>
    %5 = arith.addf %2, %4 : vector<2x7xf32>
    %c0_5 = arith.constant 0 : index
    %c0_6 = arith.constant 0 : index
    %6 = vector.load %arg4[%c0_5, %c0_6] : memref<2x7xf32, #tpu.memory_space<vmem>>, vector<2x7xf32>
    tpu.vector_store %arg4[%c0_5, %c0_6], %5 {strides = array<i32>} : memref<2x7xf32, #tpu.memory_space<vmem>>, vector<2x7xf32>,
    return
  }
  func.func @transform_0(%arg0: i32) -> (i32, i32) {
    %c0_i32 = arith.constant 0 : i32
    %c0_i32_0 = arith.constant 0 : i32
    return %arg0, %c0_i32 : i32, i32
  }
  func.func @transform_1(%arg0: i32) -> (i32, i32) {
    %c0_i32 = arith.constant 0 : i32
    %c0_i32_0 = arith.constant 0 : i32
    %c0_i32_1 = arith.constant 0 : i32
    return %c0_i32, %c0_i32_0 : i32, i32
  }
  func.func @transform_2(%arg0: i32) -> (i32, i32) {
    %c0_i32 = arith.constant 0 : i32
    %c0_i32_0 = arith.constant 0 : i32
    %c0_i32_1 = arith.constant 0 : i32
    return %c0_i32, %c0_i32_0 : i32, i32
  }
  func.func @transform_3(%arg0: i32) -> (i32, i32) {
    %c0_i32 = arith.constant 0 : i32
    %c0_i32_0 = arith.constant 0 : i32
    return %arg0, %c0_i32 : i32, i32
  }
}

</mosaic_0001>

<bundles_post_ra>
// kernel: fc_forward.1
= control target key start
LH: loop header
LB: loop body
LE: loop exit
PB: predicated region body
PF: predicated region fallthrough
CT: control target
= control target key end

     0   :  { %v1513_v47 = vmov 1983009808   ;;  %v290_v49 = vlaneseq  ;;  %s2370_s0 = inlined_call_operand.vmem [shape: f32[2,2048], index: 0, kind: input, shape index: {}]   ;;  %s2371_s1 = inlined_call_operand.vmem [shape: f32[2048,7], index: 1, kind: input, shape index: {}]   ;;  %s2372_s2 = inlined_call_operand.vmem [shape: f32[1,7], index: 2, kind: input, shape index: {}]   ;;  %s2373_s3 = inlined_call_operand.hbm [shape: f32[2,7], index: 3, kind: output, shape index: {}]  }
   0x1   :  { %v35_v0 = vld [vmem:[%s2371_s1 + $0x80] sm:$0xff]  ;;  %v36_v1 = vld [vmem:[%s2371_s1 + $0x88] sm:$0xff]  ;;  %v37_v11 = vld [vmem:[%s2371_s1 + $0x90] sm:$0xff]  ;;  %v288_v48 = vunpack.c.l.s4 %v1513_v47 }
   0x2   :  { %v19_v2 = vld [vmem:[%s2371_s1] sm:$0xff]  ;;  %v1227_v3 = vpack.c.bf16 %v36_v1, %v35_v0  ;;  %v20_v4 = vld [vmem:[%s2371_s1 + $0x8] sm:$0xff]  ;;  %v38_v13 = vld [vmem:[%s2371_s1 + $0x98] sm:$0xff]  ;;  %v291_v0 = vshrl.u32 %v290_v49, 7 }
   0x3   :  { %v67_v5 = vld [vmem:[%s2371_s1 + $0x180] sm:$0xff]  ;;  %v68_v6 = vld [vmem:[%s2371_s1 + $0x188] sm:$0xff]  ;;  %v1229_v7 = vpack.c.bf16 %v20_v4, %v19_v2  ;;  %v21_v14 = vld [vmem:[%s2371_s1 + $0x10] sm:$0xff]  ;;  %v1231_v16 = vpack.c.bf16 %v38_v13, %v37_v11  ;;  %v289_v63 = vunpack.c.0.s8 %v288_v48 }
   0x4   :  { %v1259_v8 = vpack.c.bf16 %v68_v6, %v67_v5  ;;  %v51_v9 = vld [vmem:[%s2371_s1 + $0x100] sm:$0xff]  ;;  %v52_v10 = vld [vmem:[%s2371_s1 + $0x108] sm:$0xff]  ;;  %1228 = vmatprep.subr.bf16.mxu0 %v1227_v3  ;;  %v22_v15 = vld [vmem:[%s2371_s1 + $0x18] sm:$0xff] }
   0x5   :  { %v1261_v12 = vpack.c.bf16 %v52_v10, %v51_v9  ;;  %1230 = vmatpush3.bf16.msra.mxu0 %v1229_v7  ;;  %v1233_v17 = vpack.c.bf16 %v22_v15, %v21_v14  ;;  %v69_v18 = vld [vmem:[%s2371_s1 + $0x190] sm:$0xff]  ;;  %v70_v19 = vld [vmem:[%s2371_s1 + $0x198] sm:$0xff]  ;;  %v39_v23 = vld [vmem:[%s2371_s1 + $0xa0] sm:$0xff]  ;;  %v1685_v13 = vsub.s32 %v289_v63, %v291_v0 }
   0x6   :  { %1260 = vmatprep.subr.bf16.mxu1 %v1259_v8  ;;  %v53_v20 = vld [vmem:[%s2371_s1 + $0x110] sm:$0xff]  ;;  %v1263_v21 = vpack.c.bf16 %v70_v19, %v69_v18  ;;  %v54_v22 = vld [vmem:[%s2371_s1 + $0x118] sm:$0xff]  ;;  %v40_v24 = vld [vmem:[%s2371_s1 + $0xa8] sm:$0xff]  ;;  %1232 = vmatprep.subr.bf16.mxu0 %v1231_v16 }
   0x7   :  { %1262 = vmatpush3.bf16.msra.mxu1 %v1261_v12  ;;  %v1265_v25 = vpack.c.bf16 %v54_v22, %v53_v20  ;;  %v1235_v26 = vpack.c.bf16 %v40_v24, %v39_v23  ;;  %v23_v27 = vld [vmem:[%s2371_s1 + $0x20] sm:$0xff]  ;;  %v24_v28 = vld [vmem:[%s2371_s1 + $0x28] sm:$0xff]  ;;  %v41_v35 = vld [vmem:[%s2371_s1 + $0xb0] sm:$0xff] }
   0x8   :  { %v71_v29 = vld [vmem:[%s2371_s1 + $0x1a0] sm:$0xff]  ;;  %1264 = vmatprep.subr.bf16.mxu1 %v1263_v21  ;;  %v72_v30 = vld [vmem:[%s2371_s1 + $0x1a8] sm:$0xff]  ;;  %v1237_v33 = vpack.c.bf16 %v24_v28, %v23_v27  ;;  %v42_v36 = vld [vmem:[%s2371_s1 + $0xb8] sm:$0xff] }
   0x9   :  { %v55_v31 = vld [vmem:[%s2371_s1 + $0x120] sm:$0xff]  ;;  %v56_v32 = vld [vmem:[%s2371_s1 + $0x128] sm:$0xff]  ;;  %1234 = vmatpush3.bf16.msra.mxu0 %v1233_v17  ;;  %v1267_v34 = vpack.c.bf16 %v72_v30, %v71_v29  ;;  %v25_v37 = vld [vmem:[%s2371_s1 + $0x30] sm:$0xff]  ;;  %v1239_v39 = vpack.c.bf16 %v42_v36, %v41_v35 }
   0xa   :  { %1236 = vmatprep.subr.bf16.mxu0 %v1235_v26  ;;  %v1269_v38 = vpack.c.bf16 %v56_v32, %v55_v31  ;;  %v26_v40 = vld [vmem:[%s2371_s1 + $0x38] sm:$0xff]  ;;  %v73_v41 = vld [vmem:[%s2371_s1 + $0x1b0] sm:$0xff]  ;;  %v43_v46 = vld [vmem:[%s2371_s1 + $0xc0] sm:$0xff] }
   0xb   :  { %1266 = vmatpush3.bf16.msra.mxu1 %v1265_v25  ;;  %v74_v42 = vld [vmem:[%s2371_s1 + $0x1b8] sm:$0xff]  ;;  %v57_v44 = vld [vmem:[%s2371_s1 + $0x130] sm:$0xff]  ;;  %v44_v50 = vld [vmem:[%s2371_s1 + $0xc8] sm:$0xff]  ;;  %v1241_v51 = vpack.c.bf16 %v26_v40, %v25_v37 }
   0xc   :  { %1268 = vmatprep.subr.bf16.mxu1 %v1267_v34  ;;  %v1271_v43 = vpack.c.bf16 %v74_v42, %v73_v41  ;;  %v58_v45 = vld [vmem:[%s2371_s1 + $0x138] sm:$0xff]  ;;  %v75_v52 = vld [vmem:[%s2371_s1 + $0x1c0] sm:$0xff]  ;;  %v76_v53 = vld [vmem:[%s2371_s1 + $0x1c8] sm:$0xff]  ;;  %v1243_v55 = vpack.c.bf16 %v44_v50, %v43_v46 }
   0xd   :  { %1238 = vmatpush3.bf16.msra.mxu0 %v1237_v33  ;;  %v1273_v54 = vpack.c.bf16 %v58_v45, %v57_v44  ;;  %v27_v56 = vld [vmem:[%s2371_s1 + $0x40] sm:$0xff]  ;;  %v28_v57 = vld [vmem:[%s2371_s1 + $0x48] sm:$0xff]  ;;  %v1275_v59 = vpack.c.bf16 %v76_v53, %v75_v52  ;;  %v45_v61 = vld [vmem:[%s2371_s1 + $0xd0] sm:$0xff] }
   0xe   :  { %1240 = vmatprep.subr.bf16.mxu0 %v1239_v39  ;;  %v59_v58 = vld [vmem:[%s2371_s1 + $0x140] sm:$0xff]  ;;  %v60_v60 = vld [vmem:[%s2371_s1 + $0x148] sm:$0xff]  ;;  %v46_v62 = vld [vmem:[%s2371_s1 + $0xd8] sm:$0xff]  ;;  %v1245_v3 = vpack.c.bf16 %v28_v57, %v27_v56 }
   0xf   :  { %1270 = vmatpush3.bf16.msra.mxu1 %v1269_v38  ;;  %v77_v1 = vld [vmem:[%s2371_s1 + $0x1d0] sm:$0xff]  ;;  %v78_v2 = vld [vmem:[%s2371_s1 + $0x1d8] sm:$0xff]  ;;  %v1277_v4 = vpack.c.bf16 %v60_v60, %v59_v58  ;;  %v1247_v5 = vpack.c.bf16 %v46_v62, %v45_v61  ;;  %v47_v11 = vld [vmem:[%s2371_s1 + $0xe0] sm:$0xff] }
  0x10   :  { %1272 = vmatprep.subr.bf16.mxu1 %v1271_v43  ;;  %v29_v6 = vld [vmem:[%s2371_s1 + $0x50] sm:$0xff]  ;;  %v30_v7 = vld [vmem:[%s2371_s1 + $0x58] sm:$0xff]  ;;  %v1279_v9 = vpack.c.bf16 %v78_v2, %v77_v1  ;;  %v48_v12 = vld [vmem:[%s2371_s1 + $0xe8] sm:$0xff] }
  0x11   :  { %1242 = vmatpush3.bf16.msra.mxu0 %v1241_v51  ;;  %v61_v8 = vld [vmem:[%s2371_s1 + $0x150] sm:$0xff]  ;;  %v62_v10 = vld [vmem:[%s2371_s1 + $0x158] sm:$0xff]  ;;  %v79_v14 = vld [vmem:[%s2371_s1 + $0x1e0] sm:$0xff]  ;;  %v1249_v16 = vpack.c.bf16 %v30_v7, %v29_v6  ;;  %v1251_v19 = vpack.c.bf16 %v48_v12, %v47_v11 }
  0x12   :  { %1244 = vmatprep.subr.bf16.mxu0 %v1243_v55  ;;  %v80_v15 = vld [vmem:[%s2371_s1 + $0x1e8] sm:$0xff]  ;;  %v31_v17 = vld [vmem:[%s2371_s1 + $0x60] sm:$0xff]  ;;  %v1281_v18 = vpack.c.bf16 %v62_v10, %v61_v8  ;;  %v49_v25 = vld [vmem:[%s2371_s1 + $0xf0] sm:$0xff] }
  0x13   :  { %1274 = vmatpush3.bf16.msra.mxu1 %v1273_v54  ;;  %v32_v20 = vld [vmem:[%s2371_s1 + $0x68] sm:$0xff]  ;;  %v63_v21 = vld [vmem:[%s2371_s1 + $0x160] sm:$0xff]  ;;  %v1283_v23 = vpack.c.bf16 %v80_v15, %v79_v14  ;;  %v50_v26 = vld [vmem:[%s2371_s1 + $0xf8] sm:$0xff] }
  0x14   :  { %1276 = vmatprep.subr.bf16.mxu1 %v1275_v59  ;;  %v15_v22 = vld [vmem:[%s2370_s0] sm:$0xff]  ;;  %v64_v24 = vld [vmem:[%s2371_s1 + $0x168] sm:$0xff]  ;;  %v81_v29 = vld [vmem:[%s2371_s1 + $0x1f0] sm:$0xff]  ;;  %v1253_v31 = vpack.c.bf16 %v32_v20, %v31_v17  ;;  %v1255_v35 = vpack.c.bf16 %v50_v26, %v49_v25 }
  0x15   :  { %1246 = vmatpush3.bf16.msra.mxu0 %v1245_v3  ;;  %v293_v27 = vrot.slane %v15_v22, %v1685_v13  ;;  %v286_v28 = vcombine.high %v15_v22, %v15_v22  ;;  %v82_v30 = vld [vmem:[%s2371_s1 + $0x1f8] sm:$0xff]  ;;  %v1285_v34 = vpack.c.bf16 %v64_v24, %v63_v21  ;;  %v33_v36 = vld [vmem:[%s2371_s1 + $0x70] sm:$0xff]  ;;  %v99_v41 = vld [vmem:[%s2371_s1 + $0x280] sm:$0xff] }
  0x16   :  { %1248 = vmatprep.subr.bf16.mxu0 %v1247_v5  ;;  %v34_v37 = vld [vmem:[%s2371_s1 + $0x78] sm:$0xff]  ;;  %v65_v38 = vld [vmem:[%s2371_s1 + $0x170] sm:$0xff]  ;;  %v1287_v39 = vpack.c.bf16 %v82_v30, %v81_v29  ;;  %v100_v42 = vld [vmem:[%s2371_s1 + $0x288] sm:$0xff] }
  0x17   :  { %1278 = vmatpush3.bf16.msra.mxu1 %v1277_v4  ;;  %v301_v32 = vcombine.high %v293_v27, %v293_v27  ;;  %v300_v33 = vrot.slane %v286_v28, %v1685_v13  ;;  %v66_v40 = vld [vmem:[%s2371_s1 + $0x178] sm:$0xff]  ;;  %v131_v44 = vld [vmem:[%s2371_s1 + $0x380] sm:$0xff]  ;;  %v132_v45 = vld [vmem:[%s2371_s1 + $0x388] sm:$0xff]  ;;  %v1257_v46 = vpack.c.bf16 %v34_v37, %v33_v36  ;;  %v1291_v48 = vpack.c.bf16 %v100_v42, %v99_v41 }
  0x18   :  { %1280 = vmatprep.subr.bf16.mxu1 %v1279_v9  ;;  %v1289_v47 = vpack.c.bf16 %v66_v40, %v65_v38  ;;  %v83_v49 = vld [vmem:[%s2371_s1 + $0x200] sm:$0xff]  ;;  %v84_v50 = vld [vmem:[%s2371_s1 + $0x208] sm:$0xff]  ;;  %v1323_v52 = vpack.c.bf16 %v132_v45, %v131_v44  ;;  %v101_v54 = vld [vmem:[%s2371_s1 + $0x290] sm:$0xff] }
  0x19   :  { %1250 = vmatpush3.bf16.msra.mxu0 %v1249_v16  ;;  %434 = vmatprep.mubr.f32.mxu0 %v301_v32  ;;  %v302_v43 = vcombine.high %v300_v33, %v300_v33  ;;  %v115_v51 = vld [vmem:[%s2371_s1 + $0x300] sm:$0xff]  ;;  %v116_v53 = vld [vmem:[%s2371_s1 + $0x308] sm:$0xff]  ;;  %v102_v55 = vld [vmem:[%s2371_s1 + $0x298] sm:$0xff]  ;;  %v1293_v58 = vpack.c.bf16 %v84_v50, %v83_v49 }
  0x1a   :  { %1252 = vmatprep.subr.bf16.mxu0 %v1251_v19  ;;  %v133_v56 = vld [vmem:[%s2371_s1 + $0x390] sm:$0xff]  ;;  %v134_v57 = vld [vmem:[%s2371_s1 + $0x398] sm:$0xff]  ;;  %v1325_v59 = vpack.c.bf16 %v116_v53, %v115_v51  ;;  %v1295_v60 = vpack.c.bf16 %v102_v55, %v101_v54  ;;  %v103_v2 = vld [vmem:[%s2371_s1 + $0x2a0] sm:$0xff] }
  0x1b   :  { %1282 = vmatpush3.bf16.msra.mxu1 %v1281_v18  ;;  %504 = vmatprep.mubr.f32.mxu1 %v302_v43  ;;  %v85_v61 = vld [vmem:[%s2371_s1 + $0x210] sm:$0xff]  ;;  %v86_v62 = vld [vmem:[%s2371_s1 + $0x218] sm:$0xff]  ;;  %v1327_v0 = vpack.c.bf16 %v134_v57, %v133_v56  ;;  %v104_v3 = vld [vmem:[%s2371_s1 + $0x2a8] sm:$0xff] }
  0x1c   :  { %1284 = vmatprep.subr.bf16.mxu1 %v1283_v23  ;;  %v117_v63 = vld [vmem:[%s2371_s1 + $0x310] sm:$0xff]  ;;  %v118_v1 = vld [vmem:[%s2371_s1 + $0x318] sm:$0xff]  ;;  %v135_v4 = vld [vmem:[%s2371_s1 + $0x3a0] sm:$0xff]  ;;  %v1297_v6 = vpack.c.bf16 %v86_v62, %v85_v61  ;;  %v1299_v8 = vpack.c.bf16 %v104_v3, %v103_v2 }
  0x1d   :  { %1254 = vmatpush3.bf16.msra.mxu0 %v1253_v31  ;;  %v136_v5 = vld [vmem:[%s2371_s1 + $0x3a8] sm:$0xff]  ;;  %v1329_v7 = vpack.c.bf16 %v118_v1, %v117_v63  ;;  %v87_v9 = vld [vmem:[%s2371_s1 + $0x220] sm:$0xff]  ;;  %v105_v15 = vld [vmem:[%s2371_s1 + $0x2b0] sm:$0xff] }
  0x1e   :  { %1256 = vmatprep.subr.bf16.mxu0 %v1255_v35  ;;  %v88_v10 = vld [vmem:[%s2371_s1 + $0x228] sm:$0xff]  ;;  %v119_v11 = vld [vmem:[%s2371_s1 + $0x320] sm:$0xff]  ;;  %v1331_v12 = vpack.c.bf16 %v136_v5, %v135_v4  ;;  %v106_v16 = vld [vmem:[%s2371_s1 + $0x2b8] sm:$0xff] }
  0x1f   :  { %1286 = vmatpush3.bf16.msra.mxu1 %v1285_v34  ;;  %v120_v14 = vld [vmem:[%s2371_s1 + $0x328] sm:$0xff]  ;;  %v137_v17 = vld [vmem:[%s2371_s1 + $0x3b0] sm:$0xff]  ;;  %v138_v18 = vld [vmem:[%s2371_s1 + $0x3b8] sm:$0xff]  ;;  %v1301_v19 = vpack.c.bf16 %v88_v10, %v87_v9  ;;  %v1303_v21 = vpack.c.bf16 %v106_v16, %v105_v15 }
  0x20   :  { %1288 = vmatprep.subr.bf16.mxu1 %v1287_v39  ;;  %v1333_v20 = vpack.c.bf16 %v120_v14, %v119_v11  ;;  %v89_v22 = vld [vmem:[%s2371_s1 + $0x230] sm:$0xff]  ;;  %v90_v23 = vld [vmem:[%s2371_s1 + $0x238] sm:$0xff]  ;;  %v1335_v25 = vpack.c.bf16 %v138_v18, %v137_v17  ;;  %v108_v28 = vld [vmem:[%s2371_s1 + $0x2c8] sm:$0xff] }
  0x21   :  { %1258 = vmatpush3.bf16.msra.mxu0 %v1257_v46  ;;  %v121_v24 = vld [vmem:[%s2371_s1 + $0x330] sm:$0xff]  ;;  %v122_v26 = vld [vmem:[%s2371_s1 + $0x338] sm:$0xff]  ;;  %v139_v29 = vld [vmem:[%s2371_s1 + $0x3c0] sm:$0xff]  ;;  %v1305_v32 = vpack.c.bf16 %v90_v23, %v89_v22 }
  0x22   :  { %1292 = vmatprep.subr.bf16.mxu0 %v1291_v48  ;;  %v140_v30 = vld [vmem:[%s2371_s1 + $0x3c8] sm:$0xff]  ;;  %v1337_v35 = vpack.c.bf16 %v122_v26, %v121_v24  ;;  %v91_v37 = vld [vmem:[%s2371_s1 + $0x240] sm:$0xff]  ;;  %v109_v42 = vld [vmem:[%s2371_s1 + $0x2d0] sm:$0xff] }
  0x23   :  { %1290 = vmatpush3.bf16.msra.mxu1 %v1289_v47  ;;  %v16_v31 = vld [vmem:[%s2370_s0 + $0x8] sm:$0xff]  ;;  %v123_v39 = vld [vmem:[%s2371_s1 + $0x340] sm:$0xff]  ;;  %v1339_v40 = vpack.c.bf16 %v140_v30, %v139_v29  ;;  %v110_v43 = vld [vmem:[%s2371_s1 + $0x2d8] sm:$0xff] }
  0x24   :  { %1324 = vmatprep.subr.bf16.mxu1 %v1323_v52  ;;  %435 = vmatmul.mubr.f32.vlgmr.msra.gmra.mrb[0].mxu0 %v293_v27  ;;  %v107_v27 = vld [vmem:[%s2371_s1 + $0x2c0] sm:$0xff]  ;;  %v303_v34 = vcombine.high %v16_v31, %v16_v31  ;;  %v92_v38 = vld [vmem:[%s2371_s1 + $0x248] sm:$0xff]  ;;  %v141_v46 = vld [vmem:[%s2371_s1 + $0x3d0] sm:$0xff]  ;;  %v1311_v51 = vpack.c.bf16 %v110_v43, %v109_v42 }
  0x25   :  { %1294 = vmatpush3.bf16.msra.mxu0 %v1293_v58  ;;  %v1307_v36 = vpack.c.bf16 %v108_v28, %v107_v27  ;;  %v124_v41 = vld [vmem:[%s2371_s1 + $0x348] sm:$0xff]  ;;  %v142_v47 = vld [vmem:[%s2371_s1 + $0x3d8] sm:$0xff]  ;;  %v1309_v48 = vpack.c.bf16 %v92_v38, %v91_v37  ;;  %v93_v52 = vld [vmem:[%s2371_s1 + $0x250] sm:$0xff] }
  0x26   :  { %505 = vmatmul.mubr.f32.vlgmr.msra.gmra.mrb[0].mxu1 %v300_v33  ;;  %1296 = vmatprep.subr.bf16.mxu0 %v1295_v60  ;;  %v1846_v33 = vrot.slane %v16_v31, %v1685_v13  ;;  %v1869_v45 = vrot.slane %v303_v34, %v1685_v13  ;;  %v1341_v50 = vpack.c.bf16 %v124_v41, %v123_v39  ;;  %v94_v53 = vld [vmem:[%s2371_s1 + $0x258] sm:$0xff]  ;;  %v125_v54 = vld [vmem:[%s2371_s1 + $0x350] sm:$0xff]  ;;  %v111_v57 = vld [vmem:[%s2371_s1 + $0x2e0] sm:$0xff] }
  0x27   :  { %1326 = vmatpush3.bf16.msra.mxu1 %v1325_v59  ;;  %v1343_v55 = vpack.c.bf16 %v142_v47, %v141_v46  ;;  %v126_v56 = vld [vmem:[%s2371_s1 + $0x358] sm:$0xff]  ;;  %v112_v58 = vld [vmem:[%s2371_s1 + $0x2e8] sm:$0xff]  ;;  %v143_v59 = vld [vmem:[%s2371_s1 + $0x3e0] sm:$0xff]  ;;  %v1313_v61 = vpack.c.bf16 %v94_v53, %v93_v52 }
  0x28   :  { %1328 = vmatprep.subr.bf16.mxu1 %v1327_v0  ;;  %v318_v44 = vcombine.high %v1846_v33, %v1846_v33  ;;  %v319_v49 = vcombine.high %v1869_v45, %v1869_v45  ;;  %v144_v60 = vld [vmem:[%s2371_s1 + $0x3e8] sm:$0xff]  ;;  %v1345_v62 = vpack.c.bf16 %v126_v56, %v125_v54  ;;  %v1315_v63 = vpack.c.bf16 %v112_v58, %v111_v57  ;;  %v95_v0 = vld [vmem:[%s2371_s1 + $0x260] sm:$0xff]  ;;  %v113_v5 = vld [vmem:[%s2371_s1 + $0x2f0] sm:$0xff] }
  0x29   :  { %1298 = vmatpush3.bf16.msra.mxu0 %v1297_v6  ;;  %v96_v1 = vld [vmem:[%s2371_s1 + $0x268] sm:$0xff]  ;;  %v127_v2 = vld [vmem:[%s2371_s1 + $0x360] sm:$0xff]  ;;  %v1347_v3 = vpack.c.bf16 %v144_v60, %v143_v59  ;;  %v114_v6 = vld [vmem:[%s2371_s1 + $0x2f8] sm:$0xff] }
  0x2a   :  { %1300 = vmatprep.subr.bf16.mxu0 %v1299_v8  ;;  %574 = vmatprep.mubr.f32.mxu0 %v318_v44  ;;  %v128_v4 = vld [vmem:[%s2371_s1 + $0x368] sm:$0xff]  ;;  %v146_v8 = vld [vmem:[%s2371_s1 + $0x3f8] sm:$0xff]  ;;  %v1317_v9 = vpack.c.bf16 %v96_v1, %v95_v0  ;;  %v1319_v11 = vpack.c.bf16 %v114_v6, %v113_v5  ;;  %v129_v15 = vld [vmem:[%s2371_s1 + $0x370] sm:$0xff] }
  0x2b   :  { %1330 = vmatpush3.bf16.msra.mxu1 %v1329_v7  ;;  %644 = vmatprep.mubr.f32.mxu1 %v319_v49  ;;  %v145_v7 = vld [vmem:[%s2371_s1 + $0x3f0] sm:$0xff]  ;;  %v1349_v10 = vpack.c.bf16 %v128_v4, %v127_v2  ;;  %v98_v14 = vld [vmem:[%s2371_s1 + $0x278] sm:$0xff]  ;;  %v163_v18 = vld [vmem:[%s2371_s1 + $0x480] sm:$0xff] }
  0x2c   :  { %1332 = vmatprep.subr.bf16.mxu1 %v1331_v12  ;;  %v97_v12 = vld [vmem:[%s2371_s1 + $0x270] sm:$0xff]  ;;  %v1351_v16 = vpack.c.bf16 %v146_v8, %v145_v7  ;;  %v130_v17 = vld [vmem:[%s2371_s1 + $0x378] sm:$0xff]  ;;  %v147_v23 = vld [vmem:[%s2371_s1 + $0x400] sm:$0xff] }
  0x2d   :  { %1302 = vmatpush3.bf16.msra.mxu0 %v1301_v19  ;;  %v164_v19 = vld [vmem:[%s2371_s1 + $0x488] sm:$0xff]  ;;  %v1321_v22 = vpack.c.bf16 %v98_v14, %v97_v12  ;;  %v1353_v24 = vpack.c.bf16 %v130_v17, %v129_v15  ;;  %v179_v27 = vld [vmem:[%s2371_s1 + $0x500] sm:$0xff]  ;;  %v165_v30 = vld [vmem:[%s2371_s1 + $0x490] sm:$0xff] }
  0x2e   :  { %1304 = vmatprep.subr.bf16.mxu0 %v1303_v21  ;;  %v196_v21 = vld [vmem:[%s2371_s1 + $0x588] sm:$0xff]  ;;  %v166_v31 = vld [vmem:[%s2371_s1 + $0x498] sm:$0xff]  ;;  %v17_v37 = vld [vmem:[%s2370_s0 + $0x10] sm:$0xff] }
  0x2f   :  { %1334 = vmatpush3.bf16.msra.mxu1 %v1333_v20  ;;  %v195_v20 = vld [vmem:[%s2371_s1 + $0x580] sm:$0xff]  ;;  %v148_v26 = vld [vmem:[%s2371_s1 + $0x408] sm:$0xff]  ;;  %v198_v34 = vld [vmem:[%s2371_s1 + $0x598] sm:$0xff]  ;;  %v1359_v38 = vpack.c.bf16 %v166_v31, %v165_v30  ;;  %v1988_v42 = vrot.slane %v17_v37, %v1685_v13  ;;  %v320_v43 = vcombine.high %v17_v37, %v17_v37 }
  0x30   :  { %1336 = vmatprep.subr.bf16.mxu1 %v1335_v25  ;;  %v1355_v25 = vpack.c.bf16 %v164_v19, %v163_v18  ;;  %v180_v28 = vld [vmem:[%s2371_s1 + $0x508] sm:$0xff]  ;;  %v1387_v29 = vpack.c.bf16 %v196_v21, %v195_v20  ;;  %v149_v39 = vld [vmem:[%s2371_s1 + $0x410] sm:$0xff]  ;;  %v182_v46 = vld [vmem:[%s2371_s1 + $0x518] sm:$0xff] }
  0x31   :  { %1306 = vmatpush3.bf16.msra.mxu0 %v1305_v32  ;;  %v197_v32 = vld [vmem:[%s2371_s1 + $0x590] sm:$0xff]  ;;  %v167_v47 = vld [vmem:[%s2371_s1 + $0x4a0] sm:$0xff]  ;;  %v2009_v52 = vrot.slane %v320_v43, %v1685_v13  ;;  %v152_v56 = vld [vmem:[%s2371_s1 + $0x428] sm:$0xff] }
  0x32   :  { %1308 = vmatprep.subr.bf16.mxu0 %v1307_v36  ;;  %v1389_v36 = vpack.c.bf16 %v180_v28, %v179_v27  ;;  %v181_v41 = vld [vmem:[%s2371_s1 + $0x510] sm:$0xff]  ;;  %v1391_v44 = vpack.c.bf16 %v198_v34, %v197_v32  ;;  %v199_v49 = vld [vmem:[%s2371_s1 + $0x5a0] sm:$0xff]  ;;  %v184_v59 = vld [vmem:[%s2371_s1 + $0x528] sm:$0xff] }
  0x33   :  { %1338 = vmatpush3.bf16.msra.mxu1 %v1337_v35  ;;  %v1357_v35 = vpack.c.bf16 %v148_v26, %v147_v23  ;;  %v183_v57 = vld [vmem:[%s2371_s1 + $0x520] sm:$0xff]  ;;  %v169_v60 = vld [vmem:[%s2371_s1 + $0x4b0] sm:$0xff]  ;;  %v154_v4 = vld [vmem:[%s2371_s1 + $0x438] sm:$0xff] }
  0x34   :  { %1340 = vmatprep.subr.bf16.mxu1 %v1339_v40  ;;  %v150_v40 = vld [vmem:[%s2371_s1 + $0x418] sm:$0xff]  ;;  %v1397_v1 = vpack.c.bf16 %v184_v59, %v183_v57  ;;  %v185_v5 = vld [vmem:[%s2371_s1 + $0x530] sm:$0xff]  ;;  %v171_v8 = vld [vmem:[%s2371_s1 + $0x4c0] sm:$0xff] }
  0x35   :  { %1310 = vmatpush3.bf16.msra.mxu0 %v1309_v48  ;;  %v168_v48 = vld [vmem:[%s2371_s1 + $0x4a8] sm:$0xff]  ;;  %v1361_v53 = vpack.c.bf16 %v150_v40, %v149_v39  ;;  %v186_v7 = vld [vmem:[%s2371_s1 + $0x538] sm:$0xff]  ;;  %v187_v18 = vld [vmem:[%s2371_s1 + $0x540] sm:$0xff] }
  0x36   :  { %1312 = vmatprep.subr.bf16.mxu0 %v1311_v51  ;;  %v335_v51 = vcombine.high %v1988_v42, %v1988_v42  ;;  %v1363_v54 = vpack.c.bf16 %v168_v48, %v167_v47  ;;  %v1401_v14 = vpack.c.bf16 %v186_v7, %v185_v5  ;;  %v156_v17 = vld [vmem:[%s2371_s1 + $0x448] sm:$0xff]  ;;  %v173_v21 = vld [vmem:[%s2371_s1 + $0x4d0] sm:$0xff]  ;;  %v190_v32 = vld [vmem:[%s2371_s1 + $0x558] sm:$0xff] }
  0x37   :  { %1342 = vmatpush3.bf16.msra.mxu1 %v1341_v50  ;;  %v200_v50 = vld [vmem:[%s2371_s1 + $0x5a8] sm:$0xff]  ;;  %v205_v23 = vld [vmem:[%s2371_s1 + $0x5d0] sm:$0xff]  ;;  %v175_v34 = vld [vmem:[%s2371_s1 + $0x4e0] sm:$0xff] }
  0x38   :  { %1344 = vmatprep.subr.bf16.mxu1 %v1343_v55  ;;  %v151_v55 = vld [vmem:[%s2371_s1 + $0x420] sm:$0xff]  ;;  %v1395_v58 = vpack.c.bf16 %v200_v50, %v199_v49  ;;  %v188_v20 = vld [vmem:[%s2371_s1 + $0x548] sm:$0xff]  ;;  %v157_v28 = vld [vmem:[%s2371_s1 + $0x450] sm:$0xff] }
  0x39   :  { %1314 = vmatpush3.bf16.msra.mxu0 %v1313_v61  ;;  %v170_v61 = vld [vmem:[%s2371_s1 + $0x4b8] sm:$0xff]  ;;  %v1365_v0 = vpack.c.bf16 %v152_v56, %v151_v55  ;;  %v1405_v26 = vpack.c.bf16 %v188_v20, %v187_v18  ;;  %v189_v30 = vld [vmem:[%s2371_s1 + $0x550] sm:$0xff]  ;;  %v208_v37 = vld [vmem:[%s2371_s1 + $0x5e8] sm:$0xff] }
  0x3a   :  { %1316 = vmatprep.subr.bf16.mxu0 %v1315_v63  ;;  %v202_v63 = vld [vmem:[%s2371_s1 + $0x5b8] sm:$0xff]  ;;  %v1367_v2 = vpack.c.bf16 %v170_v61, %v169_v60  ;;  %v159_v39 = vld [vmem:[%s2371_s1 + $0x460] sm:$0xff]  ;;  %v1409_v40 = vpack.c.bf16 %v190_v32, %v189_v30  ;;  %v160_v43 = vld [vmem:[%s2371_s1 + $0x468] sm:$0xff] }
  0x3b   :  { %1346 = vmatpush3.bf16.msra.mxu1 %v1345_v62  ;;  %v201_v62 = vld [vmem:[%s2371_s1 + $0x5b0] sm:$0xff]  ;;  %v178_v49 = vld [vmem:[%s2371_s1 + $0x4f8] sm:$0xff] }
  0x3c   :  { %1348 = vmatprep.subr.bf16.mxu1 %v1347_v3  ;;  %v153_v3 = vld [vmem:[%s2371_s1 + $0x430] sm:$0xff]  ;;  %v1399_v6 = vpack.c.bf16 %v202_v63, %v201_v62 }
  0x3d   :  { %1318 = vmatpush3.bf16.msra.mxu0 %v1317_v9  ;;  %v172_v9 = vld [vmem:[%s2371_s1 + $0x4c8] sm:$0xff]  ;;  %v1369_v12 = vpack.c.bf16 %v154_v4, %v153_v3  ;;  %v177_v48 = vld [vmem:[%s2371_s1 + $0x4f0] sm:$0xff] }
  0x3e   :  { %1320 = vmatprep.subr.bf16.mxu0 %v1319_v11  ;;  %v204_v11 = vld [vmem:[%s2371_s1 + $0x5c8] sm:$0xff]  ;;  %v1371_v15 = vpack.c.bf16 %v172_v9, %v171_v8 }
  0x3f   :  { %1350 = vmatpush3.bf16.msra.mxu1 %v1349_v10  ;;  %v203_v10 = vld [vmem:[%s2371_s1 + $0x5c0] sm:$0xff] }
  0x40   :  { %1352 = vmatprep.subr.bf16.mxu1 %v1351_v16  ;;  %v155_v16 = vld [vmem:[%s2371_s1 + $0x440] sm:$0xff]  ;;  %v1403_v19 = vpack.c.bf16 %v204_v11, %v203_v10 }
  0x41   :  { %1322 = vmatpush3.bf16.msra.mxu0 %v1321_v22  ;;  %v174_v22 = vld [vmem:[%s2371_s1 + $0x4d8] sm:$0xff] }
  0x42   :  { %1356 = vmatprep.subr.bf16.mxu0 %v1355_v25  ;;  %v1373_v25 = vpack.c.bf16 %v156_v17, %v155_v16  ;;  %v1375_v27 = vpack.c.bf16 %v174_v22, %v173_v21 }
  0x43   :  { %1354 = vmatpush3.bf16.msra.mxu1 %v1353_v24  ;;  %v206_v24 = vld [vmem:[%s2371_s1 + $0x5d8] sm:$0xff] }
  0x44   :  { %1388 = vmatprep.subr.bf16.mxu1 %v1387_v29  ;;  %575 = vmatmul.mubr.f32.vlgmr.msra.gmra.mrb[2].mxu0 %v1846_v33  ;;  %v1393_v33 = vpack.c.bf16 %v182_v46, %v181_v41  ;;  %v158_v29 = vld [vmem:[%s2371_s1 + $0x458] sm:$0xff]  ;;  %v1407_v31 = vpack.c.bf16 %v206_v24, %v205_v23  ;;  %v192_v46 = vld [vmem:[%s2371_s1 + $0x568] sm:$0xff] }
  0x45   :  { %1358 = vmatpush3.bf16.msra.mxu0 %v1357_v35  ;;  %714 = vmatprep.mubr.f32.mxu0 %v335_v51  ;;  %v176_v35 = vld [vmem:[%s2371_s1 + $0x4e8] sm:$0xff] }
  0x46   :  { %645 = vmatmul.mubr.f32.vlgmr.msra.gmra.mrb[2].mxu1 %v1869_v45  ;;  %1360 = vmatprep.subr.bf16.mxu0 %v1359_v38  ;;  %v336_v45 = vcombine.high %v2009_v52, %v2009_v52  ;;  %v1377_v38 = vpack.c.bf16 %v158_v29, %v157_v28  ;;  %v1379_v41 = vpack.c.bf16 %v176_v35, %v175_v34 }
  0x47   :  { %1390 = vmatpush3.bf16.msra.mxu1 %v1389_v36  ;;  %v207_v36 = vld [vmem:[%s2371_s1 + $0x5e0] sm:$0xff] }
  0x48   :  { %1392 = vmatprep.subr.bf16.mxu1 %v1391_v44  ;;  %784 = vmatprep.mubr.f32.mxu1 %v336_v45  ;;  %v191_v44 = vld [vmem:[%s2371_s1 + $0x560] sm:$0xff]  ;;  %v1411_v47 = vpack.c.bf16 %v208_v37, %v207_v36 }
  0x49   :  { %1362 = vmatpush3.bf16.msra.mxu0 %v1361_v53 }
  0x4a   :  { %1364 = vmatprep.subr.bf16.mxu0 %v1363_v54 }
  0x4b   :  { %1394 = vmatpush3.bf16.msra.mxu1 %v1393_v33 }
  0x4c   :  { %1396 = vmatprep.subr.bf16.mxu1 %v1395_v58 }
  0x4d   :  { %1366 = vmatpush3.bf16.msra.mxu0 %v1365_v0 }
  0x4e   :  { %1368 = vmatprep.subr.bf16.mxu0 %v1367_v2 }
  0x4f   :  { %1398 = vmatpush3.bf16.msra.mxu1 %v1397_v1 }
  0x50   :  { %1400 = vmatprep.subr.bf16.mxu1 %v1399_v6 }
  0x51   :  { %1370 = vmatpush3.bf16.msra.mxu0 %v1369_v12 }
  0x52   :  { %1372 = vmatprep.subr.bf16.mxu0 %v1371_v15 }
  0x53   :  { %1402 = vmatpush3.bf16.msra.mxu1 %v1401_v14 }
  0x54   :  { %1404 = vmatprep.subr.bf16.mxu1 %v1403_v19 }
  0x55   :  { %1374 = vmatpush3.bf16.msra.mxu0 %v1373_v25 }
  0x56   :  { %1376 = vmatprep.subr.bf16.mxu0 %v1375_v27 }
  0x57   :  { %1406 = vmatpush3.bf16.msra.mxu1 %v1405_v26 }
  0x58   :  { %1408 = vmatprep.subr.bf16.mxu1 %v1407_v31 }
  0x59   :  { %8 = vsyncpa [#allocation3], 0  ;;  %v209_v50 = vld [vmem:[%s2371_s1 + $0x5f0] sm:$0xff]  ;;  %v210_v51 = vld [vmem:[%s2371_s1 + $0x5f8] sm:$0xff]  ;;  %1378 = vmatpush3.bf16.msra.mxu0 %v1377_v38  ;;  %v1381_v53 = vpack.c.bf16 %v160_v43, %v159_v39  ;;  %v1413_v54 = vpack.c.bf16 %v192_v46, %v191_v44  ;;  %v1383_v55 = vpack.c.bf16 %v178_v49, %v177_v48  ;;  %vm930_vm0 = vcmask 50176  }
  0x5a   :  { %v18_v33 = vld [vmem:[%s2370_s0 + $0x18] sm:$0xff]  ;;  %1380 = vmatprep.subr.bf16.mxu0 %v1379_v41  ;;  %v161_v56 = vld [vmem:[%s2371_s1 + $0x470] sm:$0xff]  ;;  %v1415_v58 = vpack.c.bf16 %v210_v51, %v209_v50  ;;  %v227_v60 = vld [vmem:[%s2371_s1 + $0x680] sm:$0xff] }
  0x5b   :  { %1410 = vmatpush3.bf16.msra.mxu1 %v1409_v40  ;;  %v162_v57 = vld [vmem:[%s2371_s1 + $0x478] sm:$0xff]  ;;  %v193_v45 = vld [vmem:[%s2371_s1 + $0x570] sm:$0xff]  ;;  %v228_v61 = vld [vmem:[%s2371_s1 + $0x688] sm:$0xff]  ;;  %v337_v0 = vcombine.high %v18_v33, %v18_v33  ;;  %v2180_v11 = vrot.slane %v18_v33, %v1685_v13 }
  0x5c   :  { %1412 = vmatprep.subr.bf16.mxu1 %v1411_v47  ;;  %v194_v59 = vld [vmem:[%s2371_s1 + $0x578] sm:$0xff]  ;;  %v259_v62 = vld [vmem:[%s2371_s1 + $0x780] sm:$0xff]  ;;  %v260_v63 = vld [vmem:[%s2371_s1 + $0x788] sm:$0xff]  ;;  %v1385_v1 = vpack.c.bf16 %v162_v57, %v161_v56  ;;  %v1419_v3 = vpack.c.bf16 %v228_v61, %v227_v60 }
  0x5d   :  { %1382 = vmatpush3.bf16.msra.mxu0 %v1381_v53  ;;  %v1417_v2 = vpack.c.bf16 %v194_v59, %v193_v45  ;;  %v211_v4 = vld [vmem:[%s2371_s1 + $0x600] sm:$0xff]  ;;  %v212_v5 = vld [vmem:[%s2371_s1 + $0x608] sm:$0xff]  ;;  %v1451_v7 = vpack.c.bf16 %v260_v63, %v259_v62  ;;  %v229_v9 = vld [vmem:[%s2371_s1 + $0x690] sm:$0xff]  ;;  %v2189_v15 = vrot.slane %v337_v0, %v1685_v13  ;;  %v352_v25 = vcombine.high %v2180_v11, %v2180_v11 }
  0x5e   :  { %1384 = vmatprep.subr.bf16.mxu0 %v1383_v55  ;;  %v243_v6 = vld [vmem:[%s2371_s1 + $0x700] sm:$0xff]  ;;  %v244_v8 = vld [vmem:[%s2371_s1 + $0x708] sm:$0xff]  ;;  %v230_v10 = vld [vmem:[%s2371_s1 + $0x698] sm:$0xff]  ;;  %v1421_v16 = vpack.c.bf16 %v212_v5, %v211_v4 }
  0x5f   :  { %1414 = vmatpush3.bf16.msra.mxu1 %v1413_v54  ;;  %v261_v12 = vld [vmem:[%s2371_s1 + $0x790] sm:$0xff]  ;;  %v262_v14 = vld [vmem:[%s2371_s1 + $0x798] sm:$0xff]  ;;  %v1453_v17 = vpack.c.bf16 %v244_v8, %v243_v6  ;;  %v1423_v18 = vpack.c.bf16 %v230_v10, %v229_v9  ;;  %v231_v23 = vld [vmem:[%s2371_s1 + $0x6a0] sm:$0xff]  ;;  %v353_v28 = vcombine.high %v2189_v15, %v2189_v15 }
  0x60   :  { %1416 = vmatprep.subr.bf16.mxu1 %v1415_v58  ;;  %v213_v19 = vld [vmem:[%s2371_s1 + $0x610] sm:$0xff]  ;;  %v214_v20 = vld [vmem:[%s2371_s1 + $0x618] sm:$0xff]  ;;  %v1455_v13 = vpack.c.bf16 %v262_v14, %v261_v12  ;;  %v232_v24 = vld [vmem:[%s2371_s1 + $0x6a8] sm:$0xff] }
  0x61   :  { %1386 = vmatpush3.bf16.msra.mxu0 %v1385_v1  ;;  %v245_v21 = vld [vmem:[%s2371_s1 + $0x710] sm:$0xff]  ;;  %v246_v22 = vld [vmem:[%s2371_s1 + $0x718] sm:$0xff]  ;;  %v263_v26 = vld [vmem:[%s2371_s1 + $0x7a0] sm:$0xff]  ;;  %v1425_v29 = vpack.c.bf16 %v214_v20, %v213_v19  ;;  %v1427_v31 = vpack.c.bf16 %v232_v24, %v231_v23 }
  0x62   :  { %1420 = vmatprep.subr.bf16.mxu0 %v1419_v3  ;;  %v264_v27 = vld [vmem:[%s2371_s1 + $0x7a8] sm:$0xff]  ;;  %v1457_v30 = vpack.c.bf16 %v246_v22, %v245_v21  ;;  %v247_v34 = vld [vmem:[%s2371_s1 + $0x720] sm:$0xff]  ;;  %v233_v36 = vld [vmem:[%s2371_s1 + $0x6b0] sm:$0xff] }
  0x63   :  { %1418 = vmatpush3.bf16.msra.mxu1 %v1417_v2  ;;  %v216_v32 = vld [vmem:[%s2371_s1 + $0x628] sm:$0xff]  ;;  %v1459_v35 = vpack.c.bf16 %v264_v27, %v263_v26  ;;  %v234_v37 = vld [vmem:[%s2371_s1 + $0x6b8] sm:$0xff]  ;;  %v265_v38 = vld [vmem:[%s2371_s1 + $0x7b0] sm:$0xff] }
  0x64   :  { %1452 = vmatprep.subr.bf16.mxu1 %v1451_v7  ;;  %715 = vmatmul.mubr.f32.vlgmr.msra.gmra.mrb[4].mxu0 %v1988_v42  ;;  %v215_v42 = vld [vmem:[%s2371_s1 + $0x620] sm:$0xff]  ;;  %v266_v39 = vld [vmem:[%s2371_s1 + $0x7b8] sm:$0xff]  ;;  %v1431_v43 = vpack.c.bf16 %v234_v37, %v233_v36  ;;  %v217_v44 = vld [vmem:[%s2371_s1 + $0x630] sm:$0xff] }
  0x65   :  { %1422 = vmatpush3.bf16.msra.mxu0 %v1421_v16  ;;  %854 = vmatprep.mubr.f32.mxu0 %v352_v25  ;;  %v1429_v40 = vpack.c.bf16 %v216_v32, %v215_v42  ;;  %v218_v46 = vld [vmem:[%s2371_s1 + $0x638] sm:$0xff]  ;;  %v249_v47 = vld [vmem:[%s2371_s1 + $0x730] sm:$0xff]  ;;  %v1463_v48 = vpack.c.bf16 %v266_v39, %v265_v38  ;;  %v235_v50 = vld [vmem:[%s2371_s1 + $0x6c0] sm:$0xff] }
  0x66   :  { %785 = vmatmul.mubr.f32.vlgmr.msra.gmra.mrb[4].mxu1 %v2009_v52  ;;  %1424 = vmatprep.subr.bf16.mxu0 %v1423_v18  ;;  %v248_v52 = vld [vmem:[%s2371_s1 + $0x728] sm:$0xff]  ;;  %v250_v49 = vld [vmem:[%s2371_s1 + $0x738] sm:$0xff]  ;;  %v267_v53 = vld [vmem:[%s2371_s1 + $0x7c0] sm:$0xff]  ;;  %v1433_v54 = vpack.c.bf16 %v218_v46, %v217_v44 }
  0x67   :  { %1454 = vmatpush3.bf16.msra.mxu1 %v1453_v17  ;;  %924 = vmatprep.mubr.f32.mxu1 %v353_v28  ;;  %v1461_v41 = vpack.c.bf16 %v248_v52, %v247_v34  ;;  %v236_v51 = vld [vmem:[%s2371_s1 + $0x6c8] sm:$0xff]  ;;  %v1465_v55 = vpack.c.bf16 %v250_v49, %v249_v47  ;;  %v219_v57 = vld [vmem:[%s2371_s1 + $0x640] sm:$0xff]  ;;  %v237_v61 = vld [vmem:[%s2371_s1 + $0x6d0] sm:$0xff] }
  0x68   :  { %1456 = vmatprep.subr.bf16.mxu1 %v1455_v13  ;;  %v268_v33 = vld [vmem:[%s2371_s1 + $0x7c8] sm:$0xff]  ;;  %v1435_v56 = vpack.c.bf16 %v236_v51, %v235_v50  ;;  %v251_v58 = vld [vmem:[%s2371_s1 + $0x740] sm:$0xff]  ;;  %v238_v62 = vld [vmem:[%s2371_s1 + $0x6d8] sm:$0xff] }
  0x69   :  { %1426 = vmatpush3.bf16.msra.mxu0 %v1425_v29  ;;  %v220_v45 = vld [vmem:[%s2371_s1 + $0x648] sm:$0xff]  ;;  %v1467_v59 = vpack.c.bf16 %v268_v33, %v267_v53  ;;  %v269_v63 = vld [vmem:[%s2371_s1 + $0x7d0] sm:$0xff]  ;;  %v270_v0 = vld [vmem:[%s2371_s1 + $0x7d8] sm:$0xff]  ;;  %v1439_v3 = vpack.c.bf16 %v238_v62, %v237_v61 }
  0x6a   :  { %1428 = vmatprep.subr.bf16.mxu0 %v1427_v31  ;;  %v252_v60 = vld [vmem:[%s2371_s1 + $0x748] sm:$0xff]  ;;  %v1437_v1 = vpack.c.bf16 %v220_v45, %v219_v57  ;;  %v221_v4 = vld [vmem:[%s2371_s1 + $0x650] sm:$0xff]  ;;  %v222_v5 = vld [vmem:[%s2371_s1 + $0x658] sm:$0xff]  ;;  %v1471_v7 = vpack.c.bf16 %v270_v0, %v269_v63 }
  0x6b   :  { %1458 = vmatpush3.bf16.msra.mxu1 %v1457_v30  ;;  %v1469_v2 = vpack.c.bf16 %v252_v60, %v251_v58  ;;  %v253_v6 = vld [vmem:[%s2371_s1 + $0x750] sm:$0xff]  ;;  %v254_v8 = vld [vmem:[%s2371_s1 + $0x758] sm:$0xff]  ;;  %v239_v9 = vld [vmem:[%s2371_s1 + $0x6e0] sm:$0xff]  ;;  %v1441_v16 = vpack.c.bf16 %v222_v5, %v221_v4 }
  0x6c   :  { %1460 = vmatprep.subr.bf16.mxu1 %v1459_v35  ;;  %v240_v10 = vld [vmem:[%s2371_s1 + $0x6e8] sm:$0xff]  ;;  %v271_v12 = vld [vmem:[%s2371_s1 + $0x7e0] sm:$0xff]  ;;  %v1473_v17 = vpack.c.bf16 %v254_v8, %v253_v6  ;;  %v241_v23 = vld [vmem:[%s2371_s1 + $0x6f0] sm:$0xff] }
  0x6d   :  { %1430 = vmatpush3.bf16.msra.mxu0 %v1429_v40  ;;  %v272_v14 = vld [vmem:[%s2371_s1 + $0x7e8] sm:$0xff]  ;;  %v1443_v18 = vpack.c.bf16 %v240_v10, %v239_v9  ;;  %v223_v19 = vld [vmem:[%s2371_s1 + $0x660] sm:$0xff]  ;;  %v242_v24 = vld [vmem:[%s2371_s1 + $0x6f8] sm:$0xff] }
  0x6e   :  { %1432 = vmatprep.subr.bf16.mxu0 %v1431_v43  ;;  %v224_v20 = vld [vmem:[%s2371_s1 + $0x668] sm:$0xff]  ;;  %v255_v21 = vld [vmem:[%s2371_s1 + $0x760] sm:$0xff]  ;;  %v1475_v13 = vpack.c.bf16 %v272_v14, %v271_v12  ;;  %v273_v25 = vld [vmem:[%s2371_s1 + $0x7f0] sm:$0xff]  ;;  %v1447_v29 = vpack.c.bf16 %v242_v24, %v241_v23 }
  0x6f   :  { %1462 = vmatpush3.bf16.msra.mxu1 %v1461_v41  ;;  %v256_v22 = vld [vmem:[%s2371_s1 + $0x768] sm:$0xff]  ;;  %v274_v26 = vld [vmem:[%s2371_s1 + $0x7f8] sm:$0xff]  ;;  %v1445_v27 = vpack.c.bf16 %v224_v20, %v223_v19  ;;  %v225_v30 = vld [vmem:[%s2371_s1 + $0x670] sm:$0xff] }
  0x70   :  { %1464 = vmatprep.subr.bf16.mxu1 %v1463_v48  ;;  %v1477_v28 = vpack.c.bf16 %v256_v22, %v255_v21  ;;  %v226_v31 = vld [vmem:[%s2371_s1 + $0x678] sm:$0xff]  ;;  %v1479_v42 = vpack.c.bf16 %v274_v26, %v273_v25  ;;  %v257_v32 = vld [vmem:[%s2371_s1 + $0x770] sm:$0xff]  ;;  %v946_v37 = vld [vmem:[%s2372_s2] ss:$0 sm:$0xff] }
  0x71   :  { %1434 = vmatpush3.bf16.msra.mxu0 %v1433_v54  ;;  %v258_v34 = vld [vmem:[%s2371_s1 + $0x778] sm:$0xff]  ;;  %v1449_v35 = vpack.c.bf16 %v226_v31, %v225_v30  ;;  %s1514_s1 = smov [#allocation2]  }
  0x72   :  { %1436 = vmatprep.subr.bf16.mxu0 %v1435_v56  ;;  %v1481_v52 = vpack.c.bf16 %v258_v34, %v257_v32  ;;  %s938_s2 = sshll.u32 %s1514_s1, 4  ;;  %s939_s2 = int_to_ptr.vmem [resolvable:$true] %s938_s2 }
  0x73   :  { %1466 = vmatpush3.bf16.msra.mxu1 %v1465_v55  ;;  %s1489_s16 = scalar_lea.vmem %s939_s2, 32  ;;  %p1494_p1 = scmp.lt.s32.totalorder %s939_s2, %s939_s2 }
  0x74   :  { %1468 = vmatprep.subr.bf16.mxu1 %v1467_v59  ;;  %p1490_p0 = scmp.ne.s32.totalorder %s939_s2, %s1489_s16  ;;  %p1495_p2 = scmp.lt.s32.totalorder %s1489_s16, %s1489_s16 }
  0x75   :  { %1438 = vmatpush3.bf16.msra.mxu0 %v1437_v1 }
  0x76   :  { %1440 = vmatprep.subr.bf16.mxu0 %v1439_v3  ;;  %p1496_p3 = por %p1495_p2, %p1494_p1 }
  0x77   :  { %1470 = vmatpush3.bf16.msra.mxu1 %v1469_v2 }
  0x78   :  { %1472 = vmatprep.subr.bf16.mxu1 %v1471_v7  ;;  %p1497_p4 = pnand %p1496_p3, %p1490_p0 }
  0x79   :  { %1442 = vmatpush3.bf16.msra.mxu0 %v1441_v16 }
  0x7a   :  { %1444 = vmatprep.subr.bf16.mxu0 %v1443_v18 }
  0x7b   :  { %1474 = vmatpush3.bf16.msra.mxu1 %v1473_v17 }
  0x7c   :  { %1476 = vmatprep.subr.bf16.mxu1 %v1475_v13 }
  0x7d   :  { %1446 = vmatpush3.bf16.msra.mxu0 %v1445_v27 }
  0x7e   :  { %1448 = vmatprep.subr.bf16.mxu0 %v1447_v29 }
  0x7f   :  { %1478 = vmatpush3.bf16.msra.mxu1 %v1477_v28 }
  0x80   :  { %1480 = vmatprep.subr.bf16.mxu1 %v1479_v42 }
  0x81   :  { %1450 = vmatpush3.bf16.msra.mxu0 %v1449_v35 }
  0x83   :  { %1482 = vmatpush3.bf16.msra.mxu1 %v1481_v52 }
  0x84   :  { %855 = vmatmul.mubr.f32.vlgmr.msra.gmra.mrb[6].mxu0 %v2180_v11 }
  0x86   :  { %925 = vmatmul.mubr.f32.vlgmr.msra.gmra.mrb[6].mxu1 %v2189_v15 }
  0xf7   :  { %v979_v36 = vpop.f32.mrb[0].mxu0 }
  0xf8   :  { %v980_v38 = vpop.f32.mrb[1].mxu0 }
  0xf9   :  { %v1014_v39 = vpop.f32.mrb[0].mxu1  ;;  %v981_v40 = vadd.f32 %v980_v38, %v979_v36 }
  0xfa   :  { %v1015_v41 = vpop.f32.mrb[1].mxu1 }
  0xfb   :  { %v1016_v43 = vadd.f32 %v1015_v41, %v1014_v39  ;;  %v437_v44 = vadd.f32 %v981_v40, %v946_v37 }
  0xfd   :  { %v507_v46 = vadd.f32 %v1016_v43, %v437_v44 }
 0x117   :  { %v1049_v47 = vpop.f32.mrb[2].mxu0 }
 0x118   :  { %v1050_v48 = vpop.f32.mrb[3].mxu0 }
 0x119   :  { %v1084_v49 = vpop.f32.mrb[2].mxu1  ;;  %v1051_v50 = vadd.f32 %v1050_v48, %v1049_v47 }
 0x11a   :  { %v1085_v51 = vpop.f32.mrb[3].mxu1 }
 0x11b   :  { %v1086_v11 = vadd.f32 %v1085_v51, %v1084_v49  ;;  %v577_v53 = vadd.f32 %v1051_v50, %v507_v46 }
 0x11d   :  { %v647_v15 = vadd.f32 %v1086_v11, %v577_v53 }
 0x137   :  { %v1119_v33 = vpop.f32.mrb[4].mxu0 }
 0x138   :  { %v1120_v54 = vpop.f32.mrb[5].mxu0 }
 0x139   :  { %v1154_v55 = vpop.f32.mrb[4].mxu1  ;;  %v1121_v56 = vadd.f32 %v1120_v54, %v1119_v33 }
 0x13a   :  { %v1155_v57 = vpop.f32.mrb[5].mxu1 }
 0x13b   :  { %v1156_v45 = vadd.f32 %v1155_v57, %v1154_v55  ;;  %v717_v58 = vadd.f32 %v1121_v56, %v647_v15 }
 0x13d   :  { %v787_v59 = vadd.f32 %v1156_v45, %v717_v58 }
 0x157   :  { %v1189_v60 = vpop.f32.mrb[6].mxu0 }
 0x158   :  { %v1190_v61 = vpop.f32.mrb[7].mxu0 }
 0x159   :  { %v1224_v62 = vpop.f32.mrb[6].mxu1  ;;  %v1191_v63 = vadd.f32 %v1190_v61, %v1189_v60 }
 0x15a   :  { %v1225_v0 = vpop.f32.mrb[7].mxu1 }
 0x15b   :  { %v1226_v1 = vadd.f32 %v1225_v0, %v1224_v62  ;;  %v857_v2 = vadd.f32 %v1191_v63, %v787_v59 }
 0x15d   :  { %v927_v3 = vadd.f32 %v1226_v1, %v857_v2 }
 0x15f   :  { %931 = vst.msk [vmem:[#allocation2] sm:$0x3] %vm930_vm0, %v927_v3 }
 0x160   :  { %1500 = shalt.err (!%p1497_p4)
}
 0x161   :  { %s1501_s19 = scalar_lea.hbm %s2373_s3, 32 }
 0x162   :  { %p1502_p5 = scmp.ne.s32.totalorder %s2373_s3, %s1501_s19  ;;  %p1505_p6 = scmp.lt.u32.totalorder %s1501_s19, %s2373_s3 }
 0x164   :  { %p1507_p7 = pnand %p1505_p6, %p1502_p5 }
 0x166   :  { %1510 = shalt.err (!%p1507_p7)
}
 0x167   :  { %941 = dma.vmem_to_hbm [thread:$0]  %s939_s2, 32, %s2373_s3, [#allocation3]  }
 0x168   :  { %1511 = dma.done.wait [#allocation3], 32  }
 0x169   :  { %1512 = vsyncadd [#allocation3], 4294967264 }
 0x16a   :  { %945 = vsyncpa [#allocation3], 1 }

</bundles_post_ra>
